<compile_context>
chip_gen: v5e
topology: v5e:2x2
jax: 0.10.0
libtpu: 0.0.40
codegen_flags: <defaults>
</compile_context>

<pallas_src>
import math

import numpy as np
import jax
import jax.numpy as jnp
from jax.experimental import pallas as pl
from jax.experimental.pallas import tpu as pltpu

# ----------------------------- config (small, synthetic) ----------------------
BATCH = 2
SEQ = 8                      # config.block_size
EMB = 32                     # config.emb_dim
N_HEAD = 4                   # config.n_head
N_KV_HEADS = 2               # config.n_kv_heads
HEAD_DIM = EMB // N_HEAD
N_REP = N_HEAD // N_KV_HEADS
WINDOW = 4                   # config.window_size
ROPE_BASE = 10000.0

QD = N_HEAD * HEAD_DIM       # = EMB
KVD = N_KV_HEADS * HEAD_DIM
BS = BATCH * SEQ

# row offsets inside the packed constant arrays (all multiples of 8 -> clean
# sublane-aligned slices inside the kernel)
ROW_WQ = 0                         # Wq^T            (EMB, QD)
ROW_WKV = ROW_WQ + EMB             # [Wk; Wv]        (2*KVD, EMB)
ROW_WO = ROW_WKV + 2 * KVD         # Wo^T            (QD, EMB)
ROW_ROTQ = ROW_WO + QD             # block-diag rot  (QD, QD)
ROW_COSQ = ROW_ROTQ + QD           # cos * 1/sqrt(hd) (BS, QD)
ROW_SINQ = ROW_COSQ + BS           # sin * 1/sqrt(hd) (BS, QD)
CQ_ROWS = ROW_SINQ + BS

ROW_COSK = 0                       # cos^T           (KVD, BS)
ROW_SINK = ROW_COSK + KVD          # sin^T           (KVD, BS)
ROW_MASK = ROW_SINK + KVD          # additive mask   (BS, BS)
CK_ROWS = ROW_MASK + BS


# ----------------------------- Pallas kernel ----------------------------------
def swa_kernel(x_ref, cq_ref, ck_ref, rotk_ref, out_ref):
    f32 = jnp.float32
    x = x_ref[...]                                                   # (BS, D)

    # --- unpack packed constants (static, sublane-aligned ref slices) ---
    wq_t = cq_ref[ROW_WQ:ROW_WQ + EMB, :]                            # (D, QD)
    wkv = cq_ref[ROW_WKV:ROW_WKV + 2 * KVD, :]                       # (2*KVD, D)
    wo_t = cq_ref[ROW_WO:ROW_WO + QD, :]                             # (QD, D)
    rot_q = cq_ref[ROW_ROTQ:ROW_ROTQ + QD, :]                        # (QD, QD)
    cos_q = cq_ref[ROW_COSQ:ROW_COSQ + BS, :]                        # (BS, QD)
    sin_q = cq_ref[ROW_SINQ:ROW_SINQ + BS, :]                        # (BS, QD)

    cos_kt = ck_ref[ROW_COSK:ROW_COSK + KVD, :]                      # (KVD, BS)
    sin_kt = ck_ref[ROW_SINK:ROW_SINK + KVD, :]                      # (KVD, BS)
    mask_add = ck_ref[ROW_MASK:ROW_MASK + BS, :]                     # (BS, BS)
    rot_kt = rotk_ref[...]                                           # (KVD, KVD)

    # --- projections (batch folded: M = B*S for every matmul) ---
    q = jnp.dot(x, wq_t, preferred_element_type=f32)                 # (BS, QD)
    # K and V come out transposed / head-major: rows = (kv_head, d), cols = (b, s)
    kv_t = jax.lax.dot_general(wkv, x, (((1,), (1,)), ((), ())),
                               preferred_element_type=f32)           # (2*KVD, BS)
    k_t = kv_t[:KVD, :]
    v_t = kv_t[KVD:, :]

    # --- RoPE: one block-diagonal rotation matmul per tensor ---
    # q is natural (row, head*hd); 1/sqrt(hd) is folded into cos_q/sin_q.
    q = q * cos_q + jnp.dot(q, rot_q, preferred_element_type=f32) * sin_q
    # k is transposed: rope(k)^T = k^T * cos^T + (rot^T @ k^T) * sin^T
    k_t = k_t * cos_kt + jnp.dot(rot_kt, k_t, preferred_element_type=f32) * sin_kt

    # --- per-head sliding-window attention, accumulated straight through Wo ---
    out = None
    for h in range(N_HEAD):                                          # static loop
        kv = h // N_REP                                              # GQA mapping
        qh = q[:, h * HEAD_DIM:(h + 1) * HEAD_DIM]                   # (BS, hd)
        kth = k_t[kv * HEAD_DIM:(kv + 1) * HEAD_DIM, :]              # (hd, BS)  sublane slice
        vth = v_t[kv * HEAD_DIM:(kv + 1) * HEAD_DIM, :]              # (hd, BS)

        s = jnp.dot(qh, kth, preferred_element_type=f32) + mask_add  # (BS, BS)
        m = jnp.max(s, axis=-1, keepdims=True)
        p = jnp.exp(s - m)
        p = p * pl.reciprocal(jnp.sum(p, axis=-1, keepdims=True), approx=True)
        ctx = jax.lax.dot_general(p, vth, (((1,), (1,)), ((), ())),
                                  preferred_element_type=f32)        # (BS, hd)
        part = jnp.dot(ctx, wo_t[h * HEAD_DIM:(h + 1) * HEAD_DIM, :],
                       preferred_element_type=f32)                   # (BS, D)
        out = part if out is None else out + part

    out_ref[...] = out.astype(out_ref.dtype)


# ----------------------------- wrapper -----------------------------------------
def sliding_window_attention(x, c_q, c_k, rot_kt):
    B, S, D = x.shape
    assert (B, S, D) == (BATCH, SEQ, EMB)
    x2d = x.reshape(B * S, D)
    vmem = lambda: pl.BlockSpec(memory_space=pltpu.MemorySpace.VMEM)
    out2d = pl.pallas_call(
        swa_kernel,
        out_shape=jax.ShapeDtypeStruct((B * S, D), x.dtype),
        in_specs=[vmem(), vmem(), vmem(), vmem()],
        out_specs=vmem(),
    )(x2d, c_q, c_k, rot_kt)
    return out2d.reshape(B, S, D)


# ----------------------------- constant packing --------------------------------
def rope_half_tables():
    inv_freq = 1.0 / (ROPE_BASE ** (np.arange(0, HEAD_DIM, 2, dtype=np.float32) / HEAD_DIM))
    theta = np.outer(np.arange(SEQ, dtype=np.float32), inv_freq)      # (S, hd//2)
    return np.cos(theta).astype(np.float32), np.sin(theta).astype(np.float32)


def sliding_window_bias():
    bias = np.zeros((SEQ, SEQ), np.float32)
    for i in range(SEQ):
        bias[i, max(0, i - WINDOW): i + 1] = 1.0
    return bias


def pack_constants(params, cos_half, sin_half, bias):
    wq = np.asarray(params["wq"], np.float32)   # (QD, D)
    wk = np.asarray(params["wk"], np.float32)   # (KVD, D)
    wv = np.asarray(params["wv"], np.float32)   # (KVD, D)
    wo = np.asarray(params["wo"], np.float32)   # (D, QD)

    cos_full = np.repeat(cos_half, 2, axis=-1)  # (S, hd), interleaved-pair convention
    sin_full = np.repeat(sin_half, 2, axis=-1)

    # interleaved-pair rotation as a sign-permutation matrix:
    #   (x @ rot)[2i] = -x[2i+1], (x @ rot)[2i+1] = x[2i]
    rot = np.zeros((HEAD_DIM, HEAD_DIM), np.float32)
    for i in range(HEAD_DIM // 2):
        rot[2 * i + 1, 2 * i] = -1.0
        rot[2 * i, 2 * i + 1] = 1.0

    def block_diag(m, n):
        d = m.shape[0]
        out = np.zeros((n * d, n * d), np.float32)
        for j in range(n):
            out[j * d:(j + 1) * d, j * d:(j + 1) * d] = m
        return out

    rot_q = block_diag(rot, N_HEAD)                                   # (QD, QD)
    rot_kt = block_diag(rot.T, N_KV_HEADS)                            # (KVD, KVD), transposed layout

    scale = np.float32(1.0 / math.sqrt(HEAD_DIM))                     # folded into q tables
    cos_q = (np.tile(cos_full, (BATCH, N_HEAD)) * scale).astype(np.float32)   # (BS, QD)
    sin_q = (np.tile(sin_full, (BATCH, N_HEAD)) * scale).astype(np.float32)
    cos_kt = np.tile(cos_full.T, (N_KV_HEADS, BATCH)).astype(np.float32)      # (KVD, BS)
    sin_kt = np.tile(sin_full.T, (N_KV_HEADS, BATCH)).astype(np.float32)

    # additive mask: 0 where (same batch element) & (sliding window allows), else -1e30
    bias_bs = np.kron(np.eye(BATCH, dtype=np.float32), bias)          # (BS, BS)
    mask_add = np.where(bias_bs > 0, 0.0, -1e30).astype(np.float32)

    c_q = np.concatenate([wq.T, np.concatenate([wk, wv], axis=0), wo.T,
                          rot_q, cos_q, sin_q], axis=0)               # (CQ_ROWS, EMB)
    c_k = np.concatenate([cos_kt, sin_kt, mask_add], axis=0)          # (CK_ROWS, BS)
    assert c_q.shape == (CQ_ROWS, EMB) and c_k.shape == (CK_ROWS, BS)
    return jnp.asarray(c_q), jnp.asarray(c_k), jnp.asarray(rot_kt)


# ----------------------------- pure-JAX reference ------------------------------
def attention_reference(x, params, cos_half, sin_half, bias):
    B, S, D = x.shape
    q = (x @ params["wq"].T).reshape(B, S, N_HEAD, HEAD_DIM)
    k = (x @ params["wk"].T).reshape(B, S, N_KV_HEADS, HEAD_DIM)
    v = (x @ params["wv"].T).reshape(B, S, N_KV_HEADS, HEAD_DIM)

    def rope(t):  # interleaved-pair (torchtune) convention
        t2 = t.reshape(*t.shape[:-1], -1, 2)
        c = cos_half[None, :, None, :]
        s = sin_half[None, :, None, :]
        out = jnp.stack([t2[..., 0] * c - t2[..., 1] * s,
                         t2[..., 1] * c + t2[..., 0] * s], axis=-1)
        return out.reshape(t.shape)

    q, k = rope(q), rope(k)
    k = jnp.repeat(k, N_REP, axis=2)
    v = jnp.repeat(v, N_REP, axis=2)
    q, k, v = (t.transpose(0, 2, 1, 3) for t in (q, k, v))            # (B, H, S, hd)
    scores = (q @ k.transpose(0, 1, 3, 2)) / math.sqrt(HEAD_DIM)
    scores = jnp.where(bias[None, None] == 0, -jnp.inf, scores)
    p = jax.nn.softmax(scores, axis=-1)
    ctx = (p @ v).transpose(0, 2, 1, 3).reshape(B, S, D)
    return ctx @ params["wo"].T


# ----------------------------- main ---------------------------------------------
if __name__ == "__main__":
    key = jax.random.PRNGKey(0)
    ks = jax.random.split(key, 5)
    wscale = 0.05
    params = {
        "wq": wscale * jax.random.normal(ks[0], (N_HEAD * HEAD_DIM, EMB), jnp.float32),
        "wk": wscale * jax.random.normal(ks[1], (N_KV_HEADS * HEAD_DIM, EMB), jnp.float32),
        "wv": wscale * jax.random.normal(ks[2], (N_KV_HEADS * HEAD_DIM, EMB), jnp.float32),
        "wo": wscale * jax.random.normal(ks[3], (EMB, N_HEAD * HEAD_DIM), jnp.float32),
    }
    x = jax.random.normal(ks[4], (BATCH, SEQ, EMB), jnp.float32)

    cos_half, sin_half = rope_half_tables()
    bias = sliding_window_bias()
    c_q, c_k, rot_kt = pack_constants(params, cos_half, sin_half, bias)

    out = jax.block_until_ready(sliding_window_attention(x, c_q, c_k, rot_kt))

    with jax.default_matmul_precision("highest"):
        ref = jax.block_until_ready(
            attention_reference(x, params, jnp.asarray(cos_half),
                                jnp.asarray(sin_half), jnp.asarray(bias)))

    if not jnp.allclose(out, ref, atol=5e-3, rtol=5e-3):
        raise AssertionError(f"mismatch, max abs err = {jnp.max(jnp.abs(out - ref))}")
    print("KERNEL_OK")
</pallas_src>

<mosaic_0001>
module attributes {stable_mosaic.version = 11 : i64} {
  func.func @swa_kernel(%arg0: memref<16x32xf32, #tpu.memory_space<vmem>>, %arg1: memref<160x32xf32, #tpu.memory_space<vmem>>, %arg2: memref<48x16xf32, #tpu.memory_space<vmem>>, %arg3: memref<16x16xf32, #tpu.memory_space<vmem>>, %arg4: memref<16x32xf32, #tpu.memory_space<vmem>>) attributes {dimension_semantics = [], scalar_prefetch = 0 : i64, scratch_operands = 0 : i64, tpu.core_type = #tpu.core_type<tc>} {
    %c0 = arith.constant 0 : index
    %c0_0 = arith.constant 0 : index
    %0 = vector.load %arg0[%c0, %c0_0] : memref<16x32xf32, #tpu.memory_space<vmem>>, vector<16x32xf32>
    %c0_1 = arith.constant 0 : index
    %c0_2 = arith.constant 0 : index
    %1 = vector.load %arg1[%c0_1, %c0_2] : memref<160x32xf32, #tpu.memory_space<vmem>>, vector<32x32xf32>
    %c32 = arith.constant 32 : index
    %c0_3 = arith.constant 0 : index
    %2 = vector.load %arg1[%c32, %c0_3] : memref<160x32xf32, #tpu.memory_space<vmem>>, vector<32x32xf32>
    %c64 = arith.constant 64 : index
    %c0_4 = arith.constant 0 : index
    %3 = vector.load %arg1[%c64, %c0_4] : memref<160x32xf32, #tpu.memory_space<vmem>>, vector<32x32xf32>
    %c96 = arith.constant 96 : index
    %c0_5 = arith.constant 0 : index
    %4 = vector.load %arg1[%c96, %c0_5] : memref<160x32xf32, #tpu.memory_space<vmem>>, vector<32x32xf32>
    %c128 = arith.constant 128 : index
    %c0_6 = arith.constant 0 : index
    %5 = vector.load %arg1[%c128, %c0_6] : memref<160x32xf32, #tpu.memory_space<vmem>>, vector<16x32xf32>
    %c144 = arith.constant 144 : index
    %c0_7 = arith.constant 0 : index
    %6 = vector.load %arg1[%c144, %c0_7] : memref<160x32xf32, #tpu.memory_space<vmem>>, vector<16x32xf32>
    %c0_8 = arith.constant 0 : index
    %c0_9 = arith.constant 0 : index
    %7 = vector.load %arg2[%c0_8, %c0_9] : memref<48x16xf32, #tpu.memory_space<vmem>>, vector<16x16xf32>
    %c16 = arith.constant 16 : index
    %c0_10 = arith.constant 0 : index
    %8 = vector.load %arg2[%c16, %c0_10] : memref<48x16xf32, #tpu.memory_space<vmem>>, vector<16x16xf32>
    %c32_11 = arith.constant 32 : index
    %c0_12 = arith.constant 0 : index
    %9 = vector.load %arg2[%c32_11, %c0_12] : memref<48x16xf32, #tpu.memory_space<vmem>>, vector<16x16xf32>
    %c0_13 = arith.constant 0 : index
    %c0_14 = arith.constant 0 : index
    %10 = vector.load %arg3[%c0_13, %c0_14] : memref<16x16xf32, #tpu.memory_space<vmem>>, vector<16x16xf32>
    %cst = arith.constant dense<0.000000e+00> : vector<16x32xf32>
    %11 = tpu.matmul %0, %1, %cst {dimension_numbers = #tpu.dot_dimension_numbers<[1], [0], [0], [1], [0, 0, 1, 1], [], []>} : vector<16x32xf32>, vector<32x32xf32>, vector<16x32xf32> -> vector<16x32xf32>
    %cst_15 = arith.constant dense<0.000000e+00> : vector<32x16xf32>
    %12 = tpu.matmul %2, %0, %cst_15 {dimension_numbers = #tpu.dot_dimension_numbers<[1], [1], [0], [0], [0, 0, 1, 0], [], []>} : vector<32x32xf32>, vector<16x32xf32>, vector<32x16xf32> -> vector<32x16xf32>
    %13 = vector.extract_strided_slice %12 {offsets = [0, 0], sizes = [16, 16], strides = [1, 1]} : vector<32x16xf32> to vector<16x16xf32>
    %14 = vector.extract_strided_slice %12 {offsets = [16, 0], sizes = [16, 16], strides = [1, 1]} : vector<32x16xf32> to vector<16x16xf32>
    %15 = arith.mulf %11, %5 : vector<16x32xf32>
    %cst_16 = arith.constant dense<0.000000e+00> : vector<16x32xf32>
    %16 = tpu.matmul %11, %4, %cst_16 {dimension_numbers = #tpu.dot_dimension_numbers<[1], [0], [0], [1], [0, 0, 1, 1], [], []>} : vector<16x32xf32>, vector<32x32xf32>, vector<16x32xf32> -> vector<16x32xf32>
    %17 = arith.mulf %16, %6 : vector<16x32xf32>
    %18 = arith.addf %15, %17 : vector<16x32xf32>
    %19 = arith.mulf %13, %7 : vector<16x16xf32>
    %cst_17 = arith.constant dense<0.000000e+00> : vector<16x16xf32>
    %20 = tpu.matmul %10, %13, %cst_17 {dimension_numbers = #tpu.dot_dimension_numbers<[1], [0], [0], [1], [0, 0, 1, 1], [], []>} : vector<16x16xf32>, vector<16x16xf32>, vector<16x16xf32> -> vector<16x16xf32>
    %21 = arith.mulf %20, %8 : vector<16x16xf32>
    %22 = arith.addf %19, %21 : vector<16x16xf32>
    %23 = vector.extract_strided_slice %18 {offsets = [0, 0], sizes = [16, 8], strides = [1, 1]} : vector<16x32xf32> to vector<16x8xf32>
    %24 = vector.extract_strided_slice %22 {offsets = [0, 0], sizes = [8, 16], strides = [1, 1]} : vector<16x16xf32> to vector<8x16xf32>
    %25 = vector.extract_strided_slice %14 {offsets = [0, 0], sizes = [8, 16], strides = [1, 1]} : vector<16x16xf32> to vector<8x16xf32>
    %cst_18 = arith.constant dense<0.000000e+00> : vector<16x16xf32>
    %26 = tpu.matmul %23, %24, %cst_18 {dimension_numbers = #tpu.dot_dimension_numbers<[1], [0], [0], [1], [0, 0, 1, 1], [], []>} : vector<16x8xf32>, vector<8x16xf32>, vector<16x16xf32> -> vector<16x16xf32>
    %27 = arith.addf %26, %9 : vector<16x16xf32>
    %cst_19 = arith.constant dense<0xFF800000> : vector<16xf32>
    %28 = vector.multi_reduction <maximumf>, %27, %cst_19 [1] : vector<16x16xf32> to vector<16xf32>
    %29 = vector.shape_cast %28 : vector<16xf32> to vector<16x1xf32>
    %30 = vector.broadcast %29 : vector<16x1xf32> to vector<16x16xf32>
    %31 = arith.subf %27, %30 : vector<16x16xf32>
    %32 = math.exp %31 : vector<16x16xf32>
    %cst_20 = arith.constant dense<0.000000e+00> : vector<16xf32>
    %33 = vector.multi_reduction <add>, %32, %cst_20 [1] : vector<16x16xf32> to vector<16xf32>
    %34 = vector.shape_cast %33 : vector<16xf32> to vector<16x1xf32>
    %35 = tpu.reciprocal %34 {approx = true} : vector<16x1xf32> -> vector<16x1xf32>
    %36 = vector.broadcast %35 : vector<16x1xf32> to vector<16x16xf32>
    %37 = arith.mulf %32, %36 : vector<16x16xf32>
    %cst_21 = arith.constant dense<0.000000e+00> : vector<16x8xf32>
    %38 = tpu.matmul %37, %25, %cst_21 {dimension_numbers = #tpu.dot_dimension_numbers<[1], [1], [0], [0], [0, 0, 1, 0], [], []>} : vector<16x16xf32>, vector<8x16xf32>, vector<16x8xf32> -> vector<16x8xf32>
    %39 = vector.extract_strided_slice %3 {offsets = [0, 0], sizes = [8, 32], strides = [1, 1]} : vector<32x32xf32> to vector<8x32xf32>
    %cst_22 = arith.constant dense<0.000000e+00> : vector<16x32xf32>
    %40 = tpu.matmul %38, %39, %cst_22 {dimension_numbers = #tpu.dot_dimension_numbers<[1], [0], [0], [1], [0, 0, 1, 1], [], []>} : vector<16x8xf32>, vector<8x32xf32>, vector<16x32xf32> -> vector<16x32xf32>
    %41 = vector.extract_strided_slice %18 {offsets = [0, 8], sizes = [16, 8], strides = [1, 1]} : vector<16x32xf32> to vector<16x8xf32>
    %42 = vector.extract_strided_slice %22 {offsets = [0, 0], sizes = [8, 16], strides = [1, 1]} : vector<16x16xf32> to vector<8x16xf32>
    %43 = vector.extract_strided_slice %14 {offsets = [0, 0], sizes = [8, 16], strides = [1, 1]} : vector<16x16xf32> to vector<8x16xf32>
    %cst_23 = arith.constant dense<0.000000e+00> : vector<16x16xf32>
    %44 = tpu.matmul %41, %42, %cst_23 {dimension_numbers = #tpu.dot_dimension_numbers<[1], [0], [0], [1], [0, 0, 1, 1], [], []>} : vector<16x8xf32>, vector<8x16xf32>, vector<16x16xf32> -> vector<16x16xf32>
    %45 = arith.addf %44, %9 : vector<16x16xf32>
    %cst_24 = arith.constant dense<0xFF800000> : vector<16xf32>
    %46 = vector.multi_reduction <maximumf>, %45, %cst_24 [1] : vector<16x16xf32> to vector<16xf32>
    %47 = vector.shape_cast %46 : vector<16xf32> to vector<16x1xf32>
    %48 = vector.broadcast %47 : vector<16x1xf32> to vector<16x16xf32>
    %49 = arith.subf %45, %48 : vector<16x16xf32>
    %50 = math.exp %49 : vector<16x16xf32>
    %cst_25 = arith.constant dense<0.000000e+00> : vector<16xf32>
    %51 = vector.multi_reduction <add>, %50, %cst_25 [1] : vector<16x16xf32> to vector<16xf32>
    %52 = vector.shape_cast %51 : vector<16xf32> to vector<16x1xf32>
    %53 = tpu.reciprocal %52 {approx = true} : vector<16x1xf32> -> vector<16x1xf32>
    %54 = vector.broadcast %53 : vector<16x1xf32> to vector<16x16xf32>
    %55 = arith.mulf %50, %54 : vector<16x16xf32>
    %cst_26 = arith.constant dense<0.000000e+00> : vector<16x8xf32>
    %56 = tpu.matmul %55, %43, %cst_26 {dimension_numbers = #tpu.dot_dimension_numbers<[1], [1], [0], [0], [0, 0, 1, 0], [], []>} : vector<16x16xf32>, vector<8x16xf32>, vector<16x8xf32> -> vector<16x8xf32>
    %57 = vector.extract_strided_slice %3 {offsets = [8, 0], sizes = [8, 32], strides = [1, 1]} : vector<32x32xf32> to vector<8x32xf32>
    %cst_27 = arith.constant dense<0.000000e+00> : vector<16x32xf32>
    %58 = tpu.matmul %56, %57, %cst_27 {dimension_numbers = #tpu.dot_dimension_numbers<[1], [0], [0], [1], [0, 0, 1, 1], [], []>} : vector<16x8xf32>, vector<8x32xf32>, vector<16x32xf32> -> vector<16x32xf32>
    %59 = arith.addf %40, %58 : vector<16x32xf32>
    %60 = vector.extract_strided_slice %18 {offsets = [0, 16], sizes = [16, 8], strides = [1, 1]} : vector<16x32xf32> to vector<16x8xf32>
    %61 = vector.extract_strided_slice %22 {offsets = [8, 0], sizes = [8, 16], strides = [1, 1]} : vector<16x16xf32> to vector<8x16xf32>
    %62 = vector.extract_strided_slice %14 {offsets = [8, 0], sizes = [8, 16], strides = [1, 1]} : vector<16x16xf32> to vector<8x16xf32>
    %cst_28 = arith.constant dense<0.000000e+00> : vector<16x16xf32>
    %63 = tpu.matmul %60, %61, %cst_28 {dimension_numbers = #tpu.dot_dimension_numbers<[1], [0], [0], [1], [0, 0, 1, 1], [], []>} : vector<16x8xf32>, vector<8x16xf32>, vector<16x16xf32> -> vector<16x16xf32>
    %64 = arith.addf %63, %9 : vector<16x16xf32>
    %cst_29 = arith.constant dense<0xFF800000> : vector<16xf32>
    %65 = vector.multi_reduction <maximumf>, %64, %cst_29 [1] : vector<16x16xf32> to vector<16xf32>
    %66 = vector.shape_cast %65 : vector<16xf32> to vector<16x1xf32>
    %67 = vector.broadcast %66 : vector<16x1xf32> to vector<16x16xf32>
    %68 = arith.subf %64, %67 : vector<16x16xf32>
    %69 = math.exp %68 : vector<16x16xf32>
    %cst_30 = arith.constant dense<0.000000e+00> : vector<16xf32>
    %70 = vector.multi_reduction <add>, %69, %cst_30 [1] : vector<16x16xf32> to vector<16xf32>
    %71 = vector.shape_cast %70 : vector<16xf32> to vector<16x1xf32>
    %72 = tpu.reciprocal %71 {approx = true} : vector<16x1xf32> -> vector<16x1xf32>
    %73 = vector.broadcast %72 : vector<16x1xf32> to vector<16x16xf32>
    %74 = arith.mulf %69, %73 : vector<16x16xf32>
    %cst_31 = arith.constant dense<0.000000e+00> : vector<16x8xf32>
    %75 = tpu.matmul %74, %62, %cst_31 {dimension_numbers = #tpu.dot_dimension_numbers<[1], [1], [0], [0], [0, 0, 1, 0], [], []>} : vector<16x16xf32>, vector<8x16xf32>, vector<16x8xf32> -> vector<16x8xf32>
    %76 = vector.extract_strided_slice %3 {offsets = [16, 0], sizes = [8, 32], strides = [1, 1]} : vector<32x32xf32> to vector<8x32xf32>
    %cst_32 = arith.constant dense<0.000000e+00> : vector<16x32xf32>
    %77 = tpu.matmul %75, %76, %cst_32 {dimension_numbers = #tpu.dot_dimension_numbers<[1], [0], [0], [1], [0, 0, 1, 1], [], []>} : vector<16x8xf32>, vector<8x32xf32>, vector<16x32xf32> -> vector<16x32xf32>
    %78 = arith.addf %59, %77 : vector<16x32xf32>
    %79 = vector.extract_strided_slice %18 {offsets = [0, 24], sizes = [16, 8], strides = [1, 1]} : vector<16x32xf32> to vector<16x8xf32>
    %80 = vector.extract_strided_slice %22 {offsets = [8, 0], sizes = [8, 16], strides = [1, 1]} : vector<16x16xf32> to vector<8x16xf32>
    %81 = vector.extract_strided_slice %14 {offsets = [8, 0], sizes = [8, 16], strides = [1, 1]} : vector<16x16xf32> to vector<8x16xf32>
    %cst_33 = arith.constant dense<0.000000e+00> : vector<16x16xf32>
    %82 = tpu.matmul %79, %80, %cst_33 {dimension_numbers = #tpu.dot_dimension_numbers<[1], [0], [0], [1], [0, 0, 1, 1], [], []>} : vector<16x8xf32>, vector<8x16xf32>, vector<16x16xf32> -> vector<16x16xf32>
    %83 = arith.addf %82, %9 : vector<16x16xf32>
    %cst_34 = arith.constant dense<0xFF800000> : vector<16xf32>
    %84 = vector.multi_reduction <maximumf>, %83, %cst_34 [1] : vector<16x16xf32> to vector<16xf32>
    %85 = vector.shape_cast %84 : vector<16xf32> to vector<16x1xf32>
    %86 = vector.broadcast %85 : vector<16x1xf32> to vector<16x16xf32>
    %87 = arith.subf %83, %86 : vector<16x16xf32>
    %88 = math.exp %87 : vector<16x16xf32>
    %cst_35 = arith.constant dense<0.000000e+00> : vector<16xf32>
    %89 = vector.multi_reduction <add>, %88, %cst_35 [1] : vector<16x16xf32> to vector<16xf32>
    %90 = vector.shape_cast %89 : vector<16xf32> to vector<16x1xf32>
    %91 = tpu.reciprocal %90 {approx = true} : vector<16x1xf32> -> vector<16x1xf32>
    %92 = vector.broadcast %91 : vector<16x1xf32> to vector<16x16xf32>
    %93 = arith.mulf %88, %92 : vector<16x16xf32>
    %cst_36 = arith.constant dense<0.000000e+00> : vector<16x8xf32>
    %94 = tpu.matmul %93, %81, %cst_36 {dimension_numbers = #tpu.dot_dimension_numbers<[1], [1], [0], [0], [0, 0, 1, 0], [], []>} : vector<16x16xf32>, vector<8x16xf32>, vector<16x8xf32> -> vector<16x8xf32>
    %95 = vector.extract_strided_slice %3 {offsets = [24, 0], sizes = [8, 32], strides = [1, 1]} : vector<32x32xf32> to vector<8x32xf32>
    %cst_37 = arith.constant dense<0.000000e+00> : vector<16x32xf32>
    %96 = tpu.matmul %94, %95, %cst_37 {dimension_numbers = #tpu.dot_dimension_numbers<[1], [0], [0], [1], [0, 0, 1, 1], [], []>} : vector<16x8xf32>, vector<8x32xf32>, vector<16x32xf32> -> vector<16x32xf32>
    %97 = arith.addf %78, %96 : vector<16x32xf32>
    %c0_38 = arith.constant 0 : index
    %c0_39 = arith.constant 0 : index
    %98 = vector.load %arg4[%c0_38, %c0_39] : memref<16x32xf32, #tpu.memory_space<vmem>>, vector<16x32xf32>
    tpu.vector_store %arg4[%c0_38, %c0_39], %97 {strides = array<i32>} : memref<16x32xf32, #tpu.memory_space<vmem>>, vector<16x32xf32>,
    return
  }
}

</mosaic_0001>

<bundles_post_ra>
// kernel: tpu_custom_call.1
= control target key start
LH: loop header
LB: loop body
LE: loop exit
PB: predicated region body
PF: predicated region fallthrough
CT: control target
= control target key end

     0   :  { %vm48_vm0 = vcmask 261120   ;;  %s985_s0 = inlined_call_operand.vmem [shape: f32[16,32], index: 0, kind: input, shape index: {}]   ;;  %s986_s1 = inlined_call_operand.vmem [shape: f32[160,32], index: 1, kind: input, shape index: {}]   ;;  %s987_s2 = inlined_call_operand.vmem [shape: f32[48,16], index: 2, kind: input, shape index: {}]   ;;  %s988_s3 = inlined_call_operand.vmem [shape: f32[16,16], index: 3, kind: input, shape index: {}]   ;;  %s989_s4 = inlined_call_operand.hbm [shape: f32[16,32], index: 4, kind: output, shape index: {}]  }
   0x1   :  { %v23_v0 = vld [vmem:[%s986_s1 + $0x18] sm:$0xff]  ;;  %v19_v1 = vld [vmem:[%s985_s0 + $0x8] sm:$0xff]  ;;  %v22_v2 = vld [vmem:[%s986_s1 + $0x10] sm:$0xff] }
   0x2   :  { %67 = vmatpush.msra.mxu0 %v23_v0  ;;  %665 = vmatpush.xpose.msk.msra.mxu1 %vm48_vm0, %v19_v1  ;;  %v21_v3 = vld [vmem:[%s986_s1 + $0x8] sm:$0xff]  ;;  %v18_v4 = vld [vmem:[%s985_s0] sm:$0xff]  ;;  %v35_v5 = vld [vmem:[%s986_s1 + $0x78] sm:$0xff] }
   0x3   :  { %139 = vmatpush.msra.mxu2 %v35_v5  ;;  %v34_v6 = vld [vmem:[%s986_s1 + $0x70] sm:$0xff]  ;;  %v20_v7 = vld [vmem:[%s986_s1] sm:$0xff] }
   0x4   :  { %68 = vmatpush.msra.mxu0 %v22_v2 }
   0x5   :  { %9 = vsyncpa [#allocation3], 0  ;;  %v24_v8 = vld [vmem:[%s986_s1 + $0x20] sm:$0xff]  ;;  %140 = vmatpush.msra.mxu2 %v34_v6  ;;  %v33_v9 = vld [vmem:[%s986_s1 + $0x68] sm:$0xff]  ;;  %vm156_vm1 = vcmask 130048   ;;  %s769_s25 = smov 120  }
   0x6   :  { %69 = vmatpush.msra.mxu0 %v21_v3  ;;  %666 = vmatpush.xpose.msk.msra.mxu1 %vm48_vm0, %v18_v4  ;;  %v25_v10 = vld [vmem:[%s986_s1 + $0x28] sm:$0xff]  ;;  %v32_v11 = vld [vmem:[%s986_s1 + $0x60] sm:$0xff]  ;;  %v38_v20 = vld [vmem:[%s986_s1 + $0x90] sm:$0xff]  ;;  %vm190_vm2 = vcmask 64512   ;;  %s770_s7 = smov 112   ;;  %s771_s8 = smov 104  }
   0x7   :  { %141 = vmatpush.msra.mxu2 %v33_v9  ;;  %v46_v16 = vld [vmem:[%s988_s3] sm:$0xff]  ;;  %v47_v17 = vld [vmem:[%s988_s3 + $0x8] sm:$0xff]  ;;  %v42_v25 = vld [vmem:[%s987_s2 + $0x10] sm:$0xff]  ;;  %s651_s24 = sshll.u32 %s989_s4, 4  ;;  %s774_s26 = smov 8   ;;  %s652_s24 = int_to_ptr.hbm [resolvable:$true] %s651_s24 }
   0x8   :  { %70 = vmatpush.msra.mxu0 %v20_v7  ;;  %v28_v18 = vld [vmem:[%s986_s1 + $0x40] sm:$0xff]  ;;  %v37_v28 = vld [vmem:[%s986_s1 + $0x88] sm:$0xff]  ;;  %v39_v30 = vld [vmem:[%s986_s1 + $0x98] sm:$0xff] }
   0x9   :  { %663 = vmatmul.msk.f32.vlgmr.msra.gmra.mxu0 %vm48_vm0, %v18_v4  ;;  %667 = vmatmul.msk.f32.vlgmr.msra.gmra.mxu1 %vm48_vm0, %v24_v8  ;;  %v36_v19 = vld [vmem:[%s986_s1 + $0x80] sm:$0xff]  ;;  %v41_v36 = vld [vmem:[%s987_s2 + $0x8] sm:$0xff]  ;;  %v43_v37 = vld [vmem:[%s987_s2 + $0x18] sm:$0xff] }
   0xa   :  { %142 = vmatpush.msra.mxu2 %v32_v11  ;;  %406 = vmatpush.msrb.mxu1 %v28_v18  ;;  %v40_v26 = vld [vmem:[%s987_s2] sm:$0xff]  ;;  %v898_v49 = vld [vmem:[%s987_s2 + $0x28] sm:$0xff]  ;;  %v26_v59 = vld [vmem:[%s986_s1 + $0x30] sm:$0xff] }
   0xb   :  { %v891_v45 = vld [vmem:[%s987_s2 + $0x20] sm:$0xff] }
  0x11   :  { %664 = vmatmul.msk.f32.gmra.mxu0 %vm48_vm0, %v19_v1  ;;  %668 = vmatmul.msk.f32.gmra.mxu1 %vm48_vm0, %v25_v10 }
  0x19   :  { %669 = vmatmul.msk.f32.gmra.mxu1 %vm48_vm0, %v26_v59 }
  0x86   :  { %v72_v12 = vpop.f32.mrf.mxu0  ;;  %v107_v13 = vpop.f32.mrf.mxu1 }
  0x87   :  { %671 = vmatmul.msk.f32.vlgmr.msra.gmra.mxu2 %vm48_vm0, %v72_v12  ;;  %v119_v22 = vmul.f32 %v72_v12, %v36_v19  ;;  %v154_v31 = vmul.f32 %v107_v13, %v40_v26 }
  0x8e   :  { %v75_v14 = vpop.f32.mrf.mxu0  ;;  %v110_v15 = vpop.f32.mrf.mxu1 }
  0x8f   :  { %672 = vmatmul.msk.f32.gmra.mxu2 %vm48_vm0, %v75_v14  ;;  %177 = vmatpush.msrb.mxu0 %v110_v15  ;;  %v120_v34 = vmul.f32 %v75_v14, %v37_v28  ;;  %v155_v40 = vmul.f32 %v110_v15, %v41_v36 }
  0x90   :  { %703 = vmatpush.msra.mxu3 %v110_v15 }
  0x91   :  { %178 = vmatpush.msrb.mxu0 %v107_v13 }
  0x92   :  { %704 = vmatpush.msra.mxu3 %v107_v13  ;;  %673 = vmatmul.msk.f32.vlgmr.msrb.gmra.mxu0 %vm156_vm1, %v46_v16  ;;  %v27_v13 = vld [vmem:[%s986_s1 + $0x38] sm:$0xff] }
  0x93   :  { %674 = vmatmul.msk.f32.vlgmr.msra.gmra.mxu3 %vm156_vm1, %v47_v17  ;;  %670 = vmatmul.msk.f32.gmra.mxu1 %vm48_vm0, %v27_v13 }
  0x96   :  { %v113_v8 = vpop.f32.mrf.mxu1 }
  0x97   :  { %677 = vmatpush.xpose.msk.msra.mxu0 %vm156_vm1, %v113_v8 }
 0x10a   :  { %v144_v21 = vpop.f32.mrf.mxu2 }
 0x10b   :  { %v150_v23 = vmul.f32 %v144_v21, %v38_v20 }
 0x10d   :  { %v861_v24 = vadd.f32 %v150_v23, %v119_v22 }
 0x10f   :  { %274 = vrot.lane.b32.xlu2 %v861_v24, %s769_s25  ;;  %v180_v27 = vpop.f32.mrf.mxu0 }
 0x110   :  { %v186_v29 = vmul.f32 %v180_v27, %v42_v25  ;;  %v116_v23 = vpop.f32.mrf.mxu1 }
 0x112   :  { %v147_v32 = vpop.f32.mrf.mxu2  ;;  %v188_v33 = vadd.f32 %v186_v29, %v154_v31 }
 0x113   :  { %v151_v35 = vmul.f32 %v147_v32, %v39_v30 }
 0x114   :  { %212 = vmatpush.msrb.mxu3 %v188_v33  ;;  %297 = vmatpush.msrb.mxu2 %v188_v33 }
 0x115   :  { %v153_v38 = vadd.f32 %v151_v35, %v120_v34  ;;  %675 = vmatmul.msk.f32.vlgmr.msrb.gmra.mxu3 %vm190_vm2, %v861_v24 }
 0x116   :  { %v183_v39 = vpop.f32.mrf.mxu3  ;;  %682 = vmatpush.xpose.msk.msra.mxu3 %vm156_vm1, %v113_v8 }
 0x117   :  { %v187_v41 = vmul.f32 %v183_v39, %v43_v37  ;;  %276 = vrot.lane.b32.xlu2 %v153_v38, %s769_s25  ;;  %s773_s25 = smov 128  }
 0x119   :  { %v189_v42 = vadd.f32 %v187_v41, %v155_v40 }
 0x11a   :  { %691 = vmatpush.xpose.msk.msrb.mxu3 %vm156_vm1, %v116_v23 }
 0x11b   :  { %437 = vmatpush.msra.mxu2 %v189_v42  ;;  %553 = vmatpush.msra.mxu1 %v189_v42 }
 0x11d   :  { %676 = vmatmul.msk.f32.gmra.mxu3 %vm190_vm2, %v153_v38 }
 0x11f   :  { %416 = vrot.lane.b32.xlu2 %v153_v38, %s770_s7 }
 0x127   :  { %532 = vrot.lane.b32.xlu2 %v153_v38, %s771_s8 }
 0x169   :  { %v275_v43 = vpop.permute.xlu2 %274 }
 0x16a   :  { %680 = vmatmul.msk.f32.vlgmr.msrb.gmra.mxu2 %vm190_vm2, %v275_v43 }
 0x16b   :  { %698 = vmatpush.xpose.msk.msrb.mxu2 %vm156_vm1, %v116_v23 }
 0x171   :  { %v277_v44 = vpop.permute.xlu2 %276 }
 0x172   :  { %681 = vmatmul.msk.f32.gmra.mxu2 %vm190_vm2, %v277_v44 }
 0x179   :  { %v417_v7 = vpop.permute.xlu2 %416 }
 0x181   :  { %v533_v26 = vpop.permute.xlu2 %532 }
 0x198   :  { %v214_v46 = vpop.f32.mrf.mxu3 }
 0x199   :  { %v215_v47 = vadd.f32 %v214_v46, %v891_v45 }
 0x19b   :  { %v220_v48 = vsel %vm156_vm1, %v215_v47, -inf }
 0x19c   :  { %221 = vmax.xlane.f32.xlu0 %v220_v48 }
 0x1a0   :  { %v217_v50 = vpop.f32.mrf.mxu3 }
 0x1a1   :  { %v218_v51 = vadd.f32 %v217_v50, %v898_v49 }
 0x1a3   :  { %v223_v52 = vsel %vm156_vm1, %v218_v51, -inf }
 0x1a4   :  { %224 = vmax.xlane.f32.xlu0 %v223_v52 }
 0x1b8   :  { %414 = vrot.lane.b32.xlu0 %v861_v24, %s770_s7 }
 0x1ed   :  { %v299_v53 = vpop.f32.mrf.mxu2 }
 0x1ee   :  { %v904_v54 = vadd.f32 %v299_v53, %v891_v45 }
 0x1f0   :  { %v305_v55 = vsel %vm156_vm1, %v904_v54, -inf }
 0x1f1   :  { %306 = vmax.xlane.f32.xlu2 %v305_v55 }
 0x1f5   :  { %v302_v56 = vpop.f32.mrf.mxu2 }
 0x1f6   :  { %v909_v57 = vadd.f32 %v302_v56, %v898_v49 }
 0x1f8   :  { %v308_v58 = vsel %vm156_vm1, %v909_v57, -inf }
 0x1f9   :  { %309 = vmax.xlane.f32.xlu0 %v308_v58 }
 0x20f   :  { %v222_v60 = vpop.xlane.xlu0 %221 }
 0x210   :  { %v226_v61 = vsub.f32 %v215_v47, %v222_v60 }
 0x212   :  { %v228_v62 = vmul.f32 1.442695, %v226_v61 }
 0x214   :  { %711 = vpow2.f32 %v228_v62 }
 0x217   :  { %v225_v63 = vpop.xlane.xlu0 %224 }
 0x218   :  { %v227_v0 = vsub.f32 %v218_v51, %v225_v63 }
 0x21a   :  { %v712_v1 = vpop.eup %711  ;;  %v230_v2 = vmul.f32 1.442695, %v227_v0 }
 0x21b   :  { %v232_v3 = vsel %vm156_vm1, %v712_v1, 0.0 }
 0x21c   :  { %713 = vpow2.f32 %v230_v2  ;;  %233 = vadd.xlane.f32.xlu1 %v232_v3 }
 0x222   :  { %v714_v4 = vpop.eup %713 }
 0x223   :  { %v235_v5 = vsel %vm156_vm1, %v714_v4, 0.0 }
 0x224   :  { %236 = vadd.xlane.f32.xlu1 %v235_v5 }
 0x22a   :  { %v415_v6 = vpop.permute.xlu0 %414 }
 0x22b   :  { %689 = vmatmul.msk.f32.vlgmr.msra.gmra.mxu2 %vm190_vm2, %v415_v6 }
 0x233   :  { %690 = vmatmul.msk.f32.gmra.mxu2 %vm190_vm2, %v417_v7 }
 0x23d   :  { %530 = vrot.lane.b32.xlu1 %v861_v24, %s771_s8 }
 0x264   :  { %v307_v28 = vpop.xlane.xlu2 %306 }
 0x265   :  { %v311_v30 = vsub.f32 %v904_v54, %v307_v28 }
 0x267   :  { %v313_v31 = vmul.f32 1.442695, %v311_v30 }
 0x26c   :  { %v310_v32 = vpop.xlane.xlu0 %309 }
 0x26d   :  { %v312_v35 = vsub.f32 %v909_v57, %v310_v32 }
 0x26f   :  { %v315_v39 = vmul.f32 1.442695, %v312_v35 }
 0x28f   :  { %v234_v9 = vpop.xlane.xlu1 %233 }
 0x290   :  { %715 = vrcp.f32 %v234_v9 }
 0x296   :  { %v716_v10 = vpop.eup %715 }
 0x297   :  { %v240_v11 = vmul.f32 %v716_v10, %v712_v1  ;;  %v237_v12 = vpop.xlane.xlu1 %236  ;;  %v29_v10 = vld [vmem:[%s986_s1 + $0x48] sm:$0xff] }
 0x298   :  { %717 = vrcp.f32 %v237_v12  ;;  %377 = vmatpush.msrb.mxu0 %v29_v10  ;;  %v30_v12 = vld [vmem:[%s986_s1 + $0x50] sm:$0xff] }
 0x299   :  { %678 = vmatmul.msk.f32.vlgmr.msra.gmra.mxu0 %vm156_vm1, %v240_v11  ;;  %719 = vpow2.f32 %v313_v31 }
 0x29a   :  { %721 = vpow2.f32 %v315_v39  ;;  %520 = vmatpush.msra.mxu0 %v30_v12 }
 0x29e   :  { %v718_v14 = vpop.eup %717 }
 0x29f   :  { %v241_v15 = vmul.f32 %v718_v14, %v714_v4  ;;  %v720_v41 = vpop.eup %719  ;;  %v31_v14 = vld [vmem:[%s986_s1 + $0x58] sm:$0xff]  ;;  %s772_s1 = smov [#allocation2]  }
 0x2a0   :  { %v317_v46 = vsel %vm156_vm1, %v720_v41, 0.0  ;;  %s649_s3 = sshll.u32 %s772_s1, 4  ;;  %s650_s3 = int_to_ptr.vmem [resolvable:$true] %s649_s3 }
 0x2a1   :  { %679 = vmatmul.msk.f32.gmra.mxu0 %vm156_vm1, %v241_v15 }
 0x2ae   :  { %v439_v16 = vpop.f32.mrf.mxu2 }
 0x2af   :  { %v440_v17 = vadd.f32 %v439_v16, %v891_v45  ;;  %v531_v25 = vpop.permute.xlu1 %530 }
 0x2b1   :  { %v445_v18 = vsel %vm156_vm1, %v440_v17, -inf }
 0x2b2   :  { %446 = vmax.xlane.f32.xlu2 %v445_v18 }
 0x2b6   :  { %v442_v19 = vpop.f32.mrf.mxu2 }
 0x2b7   :  { %v443_v20 = vadd.f32 %v442_v19, %v898_v49 }
 0x2b9   :  { %v448_v21 = vsel %vm156_vm1, %v443_v20, -inf }
 0x2ba   :  { %449 = vmax.xlane.f32.xlu2 %v448_v21 }
 0x316   :  { %v268_v22 = vpop.f32.mrf.mxu0 }
 0x317   :  { %687 = vmatmul.msk.f32.vlgmr.msrb.gmra.mxu1 %vm190_vm2, %v268_v22 }
 0x31e   :  { %v271_v24 = vpop.f32.mrf.mxu0 }
 0x31f   :  { %688 = vmatmul.msk.f32.gmra.mxu1 %vm190_vm2, %v271_v24 }
 0x325   :  { %v447_v33 = vpop.xlane.xlu2 %446 }
 0x326   :  { %v451_v37 = vsub.f32 %v440_v17, %v447_v33 }
 0x327   :  { %696 = vmatmul.msk.f32.vlgmr.msra.gmra.mxu1 %vm190_vm2, %v531_v25 }
 0x328   :  { %v453_v40 = vmul.f32 1.442695, %v451_v37 }
 0x32a   :  { %723 = vpow2.f32 %v453_v40 }
 0x32d   :  { %v450_v51 = vpop.xlane.xlu2 %449 }
 0x32e   :  { %v452_v54 = vsub.f32 %v443_v20, %v450_v51 }
 0x32f   :  { %697 = vmatmul.msk.f32.gmra.mxu1 %vm190_vm2, %v533_v26 }
 0x330   :  { %v455_v55 = vmul.f32 1.442695, %v452_v54 }
 0x394   :  { %v941_v27 = vpop.f32.mrf.mxu1 }
 0x39c   :  { %v943_v29 = vpop.f32.mrf.mxu1 }
 0x3a4   :  { %v555_v34 = vpop.f32.mrf.mxu1 }
 0x3a5   :  { %v556_v36 = vadd.f32 %v555_v34, %v891_v45  ;;  %v722_v45 = vpop.eup %721 }
 0x3a6   :  { %v724_v47 = vpop.eup %723  ;;  %v320_v50 = vsel %vm156_vm1, %v722_v45, 0.0 }
 0x3a7   :  { %v561_v38 = vsel %vm156_vm1, %v556_v36, -inf  ;;  %v457_v48 = vsel %vm156_vm1, %v724_v47, 0.0 }
 0x3a8   :  { %562 = vmax.xlane.f32.xlu1 %v561_v38 }
 0x3ac   :  { %v558_v42 = vpop.f32.mrf.mxu1 }
 0x3ad   :  { %v559_v43 = vadd.f32 %v558_v42, %v898_v49 }
 0x3af   :  { %v564_v44 = vsel %vm156_vm1, %v559_v43, -inf }
 0x3b0   :  { %565 = vmax.xlane.f32.xlu0 %v564_v44  ;;  %318 = vadd.xlane.f32.xlu1 %v317_v46 }
 0x3b8   :  { %458 = vadd.xlane.f32.xlu1 %v457_v48  ;;  %321 = vadd.xlane.f32.xlu0 %v320_v50 }
 0x41b   :  { %v563_v52 = vpop.xlane.xlu1 %562 }
 0x41c   :  { %v567_v53 = vsub.f32 %v556_v36, %v563_v52 }
 0x41e   :  { %v569_v49 = vmul.f32 1.442695, %v567_v53 }
 0x420   :  { %725 = vpow2.f32 %v569_v49 }
 0x423   :  { %v319_v56 = vpop.xlane.xlu1 %318  ;;  %v566_v57 = vpop.xlane.xlu0 %565 }
 0x424   :  { %727 = vrcp.f32 %v319_v56  ;;  %v568_v58 = vsub.f32 %v559_v43, %v566_v57 }
 0x425   :  { %729 = vpow2.f32 %v455_v55 }
 0x426   :  { %v726_v59 = vpop.eup %725  ;;  %v571_v60 = vmul.f32 1.442695, %v568_v58 }
 0x427   :  { %v573_v61 = vsel %vm156_vm1, %v726_v59, 0.0 }
 0x428   :  { %731 = vpow2.f32 %v571_v60  ;;  %574 = vadd.xlane.f32.xlu2 %v573_v61 }
 0x42a   :  { %v728_v62 = vpop.eup %727 }
 0x42b   :  { %v325_v63 = vmul.f32 %v728_v62, %v720_v41  ;;  %v322_v0 = vpop.xlane.xlu0 %321  ;;  %v730_v1 = vpop.eup %729 }
 0x42c   :  { %733 = vrcp.f32 %v322_v0  ;;  %v460_v3 = vsel %vm156_vm1, %v730_v1, 0.0  ;;  %v459_v5 = vpop.xlane.xlu1 %458 }
 0x42d   :  { %683 = vmatmul.msk.f32.vlgmr.msra.gmra.mxu3 %vm156_vm1, %v325_v63  ;;  %735 = vrcp.f32 %v459_v5 }
 0x42e   :  { %v732_v2 = vpop.eup %731  ;;  %633 = vmatpush.msra.mxu3 %v31_v14 }
 0x42f   :  { %v576_v4 = vsel %vm156_vm1, %v732_v2, 0.0 }
 0x430   :  { %461 = vadd.xlane.f32.xlu2 %v460_v3  ;;  %577 = vadd.xlane.f32.xlu0 %v576_v4 }
 0x432   :  { %v734_v6 = vpop.eup %733 }
 0x433   :  { %v326_v7 = vmul.f32 %v734_v6, %v722_v45  ;;  %v736_v8 = vpop.eup %735 }
 0x434   :  { %v465_v9 = vmul.f32 %v736_v8, %v724_v47 }
 0x435   :  { %684 = vmatmul.msk.f32.gmra.mxu3 %vm156_vm1, %v326_v7 }
 0x43d   :  { %692 = vmatmul.msk.f32.vlgmr.msrb.gmra.mxu3 %vm156_vm1, %v465_v9 }
 0x49b   :  { %v575_v11 = vpop.xlane.xlu2 %574 }
 0x49c   :  { %737 = vrcp.f32 %v575_v11 }
 0x4a2   :  { %v738_v13 = vpop.eup %737 }
 0x4a3   :  { %v581_v15 = vmul.f32 %v738_v13, %v726_v59  ;;  %v462_v16 = vpop.xlane.xlu2 %461  ;;  %v578_v17 = vpop.xlane.xlu0 %577 }
 0x4a4   :  { %739 = vrcp.f32 %v462_v16 }
 0x4a5   :  { %741 = vrcp.f32 %v578_v17  ;;  %699 = vmatmul.msk.f32.vlgmr.msrb.gmra.mxu2 %vm156_vm1, %v581_v15 }
 0x4aa   :  { %v740_v18 = vpop.eup %739 }
 0x4ab   :  { %v742_v19 = vpop.eup %741  ;;  %v466_v20 = vmul.f32 %v740_v18, %v730_v1 }
 0x4ac   :  { %v582_v21 = vmul.f32 %v742_v19, %v732_v2 }
 0x4ad   :  { %693 = vmatmul.msk.f32.gmra.mxu3 %vm156_vm1, %v466_v20 }
 0x4ae   :  { %700 = vmatmul.msk.f32.gmra.mxu2 %vm156_vm1, %v582_v21 }
 0x4b0   :  { %v350_v22 = vpop.f32.mrf.mxu3 }
 0x4b1   :  { %685 = vmatmul.msk.f32.vlgmr.msrb.gmra.mxu0 %vm190_vm2, %v350_v22 }
 0x4b8   :  { %v353_v23 = vpop.f32.mrf.mxu3 }
 0x4b9   :  { %686 = vmatmul.msk.f32.gmra.mxu0 %vm190_vm2, %v353_v23 }
 0x4c0   :  { %v493_v24 = vpop.f32.mrf.mxu3 }
 0x4c1   :  { %694 = vmatmul.msk.f32.vlgmr.msra.gmra.mxu0 %vm190_vm2, %v493_v24 }
 0x528   :  { %v606_v25 = vpop.f32.mrf.mxu2 }
 0x529   :  { %701 = vmatmul.msk.f32.vlgmr.msra.gmra.mxu3 %vm190_vm2, %v606_v25 }
 0x52e   :  { %v379_v30 = vpop.f32.mrf.mxu0 }
 0x52f   :  { %v409_v33 = vadd.f32 %v941_v27, %v379_v30 }
 0x530   :  { %v496_v26 = vpop.f32.mrf.mxu3 }
 0x531   :  { %v609_v28 = vpop.f32.mrf.mxu2  ;;  %695 = vmatmul.msk.f32.gmra.mxu0 %vm190_vm2, %v496_v26 }
 0x532   :  { %702 = vmatmul.msk.f32.gmra.mxu3 %vm190_vm2, %v609_v28 }
 0x536   :  { %v382_v31 = vpop.f32.mrf.mxu0 }
 0x537   :  { %v412_v38 = vadd.f32 %v943_v29, %v382_v31 }
 0x53e   :  { %v522_v32 = vpop.f32.mrf.mxu0 }
 0x53f   :  { %v528_v34 = vadd.f32 %v522_v32, %v409_v33 }
 0x5ac   :  { %v635_v35 = vpop.f32.mrf.mxu3 }
 0x5ad   :  { %v641_v36 = vadd.f32 %v635_v35, %v528_v34 }
 0x5ae   :  { %v525_v37 = vpop.f32.mrf.mxu0 }
 0x5af   :  { %643 = vst.msk [vmem:[#allocation2] sm:$0xff] %vm48_vm0, %v641_v36  ;;  %v529_v39 = vadd.f32 %v525_v37, %v412_v38 }
 0x5b5   :  { %v638_v40 = vpop.f32.mrf.mxu3 }
 0x5b6   :  { %v642_v41 = vadd.f32 %v638_v40, %v529_v39 }
 0x5b8   :  { %644 = vst.msk [vmem:[#allocation2 + $0x8] sm:$0xff] %vm48_vm0, %v642_v41 }
 0x5b9   :  { %657 = dma.vmem_to_hbm [thread:$0]  %s650_s3, 256, %s652_s24, [#allocation3], %s773_s25, %s773_s25, %s774_s26  }
 0x5ba   :  { %767 = dma.done.wait [#allocation3], 256  }
 0x5bb   :  { %768 = vsyncadd [#allocation3], 4294967040 }
 0x5bc   :  { %662 = vsyncpa [#allocation3], 1 }

</bundles_post_ra>
